<compile_context>
chip_gen: v5e
topology: v5e:2x2
jax: 0.10.0
libtpu: 0.0.40
codegen_flags: <defaults>
</compile_context>

<pallas_src>
import functools

import jax
import jax.numpy as jnp
from jax.experimental import pallas as pl
from jax.experimental.pallas import tpu as pltpu

HIDDEN = 768
NCLASS = 6
LANE = 128                 # lane-dense padded class axis
NOISE_LANES = 8            # narrow lane width of the U[0,1) stream (lanes 0..5 used)
TEXT_LANE_OFF = 64         # one-hot lives in lanes [64, 64+NCLASS) of the packed slab
TEMP = 0.3                 # temperature > 0 only rescales logits -> ST forward one-hot unchanged
EPS = 1e-20
NEG_BIG = -1e30            # "minus infinity" for padded class lanes


def latent_bert_h_kernel(img_ref, txt_ref, u_ref,            # (TB,768) f32, (TB,768) f32, (TB,8) f32
                         wa_ref, ba_ref, wgt_ref, bgt_ref,    # VMEM-resident padded params
                         out_ref):                            # (TB,128) f32 packed output slab
    f32 = jnp.float32

    # --- dis_image = softmax(fc_a(image), dim=1) --------------------------------------
    logits_a = jnp.dot(img_ref[...].astype(jnp.bfloat16), wa_ref[...],
                       preferred_element_type=f32) + ba_ref[...]
    m_a = jnp.max(logits_a, axis=-1, keepdims=True)
    e_a = jnp.exp(logits_a - m_a)                              # pad lanes underflow to exactly 0
    dis_image = e_a / jnp.sum(e_a, axis=-1, keepdims=True)     # exact divide (HBM-bound; free)

    # --- p = softmax(fc_gt(text), dim=1) ------------------------------------------------
    logits_gt = jnp.dot(txt_ref[...].astype(jnp.bfloat16), wgt_ref[...],
                        preferred_element_type=f32) + bgt_ref[...]
    m_gt = jnp.max(logits_gt, axis=-1, keepdims=True)
    e_gt = jnp.exp(logits_gt - m_gt)
    p = e_gt / jnp.sum(e_gt, axis=-1, keepdims=True)

    # --- straight-through Gumbel softmax (mask=None), temperature=TEMP ------------------
    # Forward value is one_hot(argmax(softmax((p + g)/TEMP))) == one_hot(argmax(p + g)):
    # softmax and the positive 1/TEMP scale never change the argmax, so both are skipped.
    g = -jnp.log(-jnp.log(u_ref[...] + EPS) + EPS)                       # (TB, 8)
    col8 = jax.lax.broadcasted_iota(jnp.int32, g.shape, 1)
    z8 = jnp.where(col8 < NCLASS, p[:, :NOISE_LANES] + g, NEG_BIG)
    z_max = jnp.max(z8, axis=-1, keepdims=True)
    first_idx = jnp.min(jnp.where(z8 == z_max, col8, NOISE_LANES),       # first max, like torch.max(1)[1]
                        axis=-1, keepdims=True)

    # --- pack both outputs into one lane-dense slab; single full-tile store -------------
    col = jax.lax.broadcasted_iota(jnp.int32, dis_image.shape, 1)
    one_hot = (col == first_idx + TEXT_LANE_OFF).astype(f32)
    # dis_image is exactly 0 on lanes >= NCLASS, so a plain add packs both halves.
    out_ref[...] = dis_image + one_hot


def _pad_params(w, b):
    """Pad Linear(768, 6) params to a lane-dense 128-wide block (bf16 W, f32 bias)."""
    w_pad = jnp.zeros((HIDDEN, LANE), jnp.bfloat16).at[:, :NCLASS].set(
        w.astype(jnp.bfloat16))
    b_pad = jnp.full((1, LANE), NEG_BIG, jnp.float32).at[:, :NCLASS].set(
        b.reshape(1, NCLASS).astype(jnp.float32))
    return w_pad, b_pad


def _round_up(x, m):
    return ((x + m - 1) // m) * m


@functools.partial(jax.jit, static_argnames=("block_batch",))
def latent_bert_h(image, text, wa, ba, wgt, bgt, noise_key, *, block_batch=512):
    """Forward pass of Latent_Bert_H. Returns (dis_image, dis_text), each (B, 6) f32."""
    batch = image.shape[0]

    # tb must be a multiple of 8 (or the full batch). Aim for >=4 grid steps so both v7x
    # TensorCores get work and the DMA/compute pipeline overlaps; cap at block_batch
    # (default 512) so f32 activation streaming stays within v5e's default scoped VMEM.
    if batch <= 8:
        tb = batch
    else:
        tb = min(block_batch, _round_up(pl.cdiv(batch, 4), 8))
        tb = max(8, (tb // 8) * 8)
    grid = (pl.cdiv(batch, tb),)

    # U[0,1) draws for the Gumbel noise (only lanes 0..5 are used) -- 32 B/row stream.
    u = jax.random.uniform(noise_key, (batch, NOISE_LANES), jnp.float32)

    wa_p, ba_p = _pad_params(wa, ba)
    wgt_p, bgt_p = _pad_params(wgt, bgt)

    act_spec = pl.BlockSpec((tb, HIDDEN), lambda i: (i, 0))    # f32 stream; bf16 cast in-kernel
    u_spec = pl.BlockSpec((tb, NOISE_LANES), lambda i: (i, 0))
    w_spec = pl.BlockSpec((HIDDEN, LANE), lambda i: (0, 0))    # constant index_map -> DMA'd once
    b_spec = pl.BlockSpec((1, LANE), lambda i: (0, 0))         # constant index_map -> DMA'd once
    out_spec = pl.BlockSpec((tb, LANE), lambda i: (i, 0))

    slab = pl.pallas_call(
        latent_bert_h_kernel,
        out_shape=jax.ShapeDtypeStruct((batch, LANE), jnp.float32),
        grid=grid,
        in_specs=[act_spec, act_spec, u_spec, w_spec, b_spec, w_spec, b_spec],
        out_specs=out_spec,
        compiler_params=pltpu.CompilerParams(
            dimension_semantics=("parallel",)),
    )(image, text, u, wa_p, ba_p, wgt_p, bgt_p)

    # Single read pass over the packed slab yields both logical outputs.
    dis_image = slab[:, :NCLASS]
    dis_text = slab[:, TEXT_LANE_OFF:TEXT_LANE_OFF + NCLASS]
    return dis_image, dis_text


def _init_linear(key, in_dim, out_dim):
    # Deterministic nn.Linear-style init: U(-1/sqrt(in_dim), 1/sqrt(in_dim)).
    kw, kb = jax.random.split(key)
    bound = 1.0 / jnp.sqrt(jnp.float32(in_dim))
    w = jax.random.uniform(kw, (in_dim, out_dim), jnp.float32, -bound, bound)
    b = jax.random.uniform(kb, (out_dim,), jnp.float32, -bound, bound)
    return w, b


if __name__ == "__main__":
    key = jax.random.PRNGKey(0)
    k_img, k_txt, k_a, k_gt, k_noise = jax.random.split(key, 5)

    batch = 8
    image = jax.random.normal(k_img, (batch, HIDDEN), jnp.float32)
    text = jax.random.normal(k_txt, (batch, HIDDEN), jnp.float32)

    wa, ba = _init_linear(k_a, HIDDEN, NCLASS)      # fc_a parameters
    wgt, bgt = _init_linear(k_gt, HIDDEN, NCLASS)   # fc_gt parameters

    dis_image, dis_text = latent_bert_h(image, text, wa, ba, wgt, bgt, k_noise)
    jax.block_until_ready((dis_image, dis_text))

    assert dis_image.shape == (batch, NCLASS)
    assert dis_text.shape == (batch, NCLASS)

    # dis_image matches a plain-JAX softmax(image @ Wa + ba) up to the bf16 matmul.
    ref = jax.nn.softmax(image @ wa + ba, axis=1)
    assert jnp.allclose(dis_image, ref, atol=3e-2)
    assert jnp.allclose(jnp.sum(dis_image, axis=1), 1.0, atol=1e-5)

    # dis_text rows are exact one-hots over the 6 classes (straight-through forward value).
    assert jnp.all(jnp.sum(dis_text, axis=1) == 1.0)
    assert jnp.all((dis_text == 0.0) | (dis_text == 1.0))

    print("KERNEL_OK")
</pallas_src>

<mosaic_0001>
module attributes {stable_mosaic.version = 11 : i64} {
  func.func @latent_bert_h_kernel(%arg0: i32, %arg1: memref<8x768xf32, #tpu.memory_space<vmem>>, %arg2: memref<8x768xf32, #tpu.memory_space<vmem>>, %arg3: memref<8x8xf32, #tpu.memory_space<vmem>>, %arg4: memref<768x128xbf16, #tpu.memory_space<vmem>>, %arg5: memref<1x128xf32, #tpu.memory_space<vmem>>, %arg6: memref<768x128xbf16, #tpu.memory_space<vmem>>, %arg7: memref<1x128xf32, #tpu.memory_space<vmem>>, %arg8: memref<8x128xf32, #tpu.memory_space<vmem>>) attributes {dimension_semantics = [#tpu.dimension_semantics<parallel>], iteration_bounds = array<i64: 1>, scalar_prefetch = 0 : i64, scratch_operands = 0 : i64, tpu.core_type = #tpu.core_type<tc>, window_params = [{transform_indices = @transform_0, window_bounds = array<i64: 8, 768>}, {transform_indices = @transform_1, window_bounds = array<i64: 8, 768>}, {transform_indices = @transform_2, window_bounds = array<i64: 8, 8>}, {pipeline_mode = #tpu.pipeline_mode<synchronous>, transform_indices = @transform_3, window_bounds = array<i64: 768, 128>}, {pipeline_mode = #tpu.pipeline_mode<synchronous>, transform_indices = @transform_4, window_bounds = array<i64: 1, 128>}, {pipeline_mode = #tpu.pipeline_mode<synchronous>, transform_indices = @transform_5, window_bounds = array<i64: 768, 128>}, {pipeline_mode = #tpu.pipeline_mode<synchronous>, transform_indices = @transform_6, window_bounds = array<i64: 1, 128>}, {transform_indices = @transform_7, window_bounds = array<i64: 8, 128>}]} {
    %c0 = arith.constant 0 : index
    %c0_0 = arith.constant 0 : index
    %0 = vector.load %arg1[%c0, %c0_0] : memref<8x768xf32, #tpu.memory_space<vmem>>, vector<8x768xf32>
    %1 = arith.truncf %0 : vector<8x768xf32> to vector<8x768xbf16>
    %c0_1 = arith.constant 0 : index
    %c0_2 = arith.constant 0 : index
    %2 = vector.load %arg4[%c0_1, %c0_2] : memref<768x128xbf16, #tpu.memory_space<vmem>>, vector<768x128xbf16>
    %cst = arith.constant dense<0.000000e+00> : vector<8x128xf32>
    %3 = tpu.matmul %1, %2, %cst {dimension_numbers = #tpu.dot_dimension_numbers<[1], [0], [0], [1], [0, 0, 1, 1], [], []>} : vector<8x768xbf16>, vector<768x128xbf16>, vector<8x128xf32> -> vector<8x128xf32>
    %c0_3 = arith.constant 0 : index
    %c0_4 = arith.constant 0 : index
    %4 = vector.load %arg5[%c0_3, %c0_4] : memref<1x128xf32, #tpu.memory_space<vmem>>, vector<1x128xf32>
    %5 = vector.broadcast %4 : vector<1x128xf32> to vector<8x128xf32>
    %6 = arith.addf %3, %5 : vector<8x128xf32>
    %cst_5 = arith.constant dense<0xFF800000> : vector<8xf32>
    %7 = vector.multi_reduction <maximumf>, %6, %cst_5 [1] : vector<8x128xf32> to vector<8xf32>
    %8 = vector.shape_cast %7 : vector<8xf32> to vector<8x1xf32>
    %9 = vector.broadcast %8 : vector<8x1xf32> to vector<8x128xf32>
    %10 = arith.subf %6, %9 : vector<8x128xf32>
    %11 = math.exp %10 : vector<8x128xf32>
    %cst_6 = arith.constant dense<0.000000e+00> : vector<8xf32>
    %12 = vector.multi_reduction <add>, %11, %cst_6 [1] : vector<8x128xf32> to vector<8xf32>
    %13 = vector.shape_cast %12 : vector<8xf32> to vector<8x1xf32>
    %14 = vector.broadcast %13 : vector<8x1xf32> to vector<8x128xf32>
    %15 = arith.divf %11, %14 : vector<8x128xf32>
    %c0_7 = arith.constant 0 : index
    %c0_8 = arith.constant 0 : index
    %16 = vector.load %arg2[%c0_7, %c0_8] : memref<8x768xf32, #tpu.memory_space<vmem>>, vector<8x768xf32>
    %17 = arith.truncf %16 : vector<8x768xf32> to vector<8x768xbf16>
    %c0_9 = arith.constant 0 : index
    %c0_10 = arith.constant 0 : index
    %18 = vector.load %arg6[%c0_9, %c0_10] : memref<768x128xbf16, #tpu.memory_space<vmem>>, vector<768x128xbf16>
    %cst_11 = arith.constant dense<0.000000e+00> : vector<8x128xf32>
    %19 = tpu.matmul %17, %18, %cst_11 {dimension_numbers = #tpu.dot_dimension_numbers<[1], [0], [0], [1], [0, 0, 1, 1], [], []>} : vector<8x768xbf16>, vector<768x128xbf16>, vector<8x128xf32> -> vector<8x128xf32>
    %c0_12 = arith.constant 0 : index
    %c0_13 = arith.constant 0 : index
    %20 = vector.load %arg7[%c0_12, %c0_13] : memref<1x128xf32, #tpu.memory_space<vmem>>, vector<1x128xf32>
    %21 = vector.broadcast %20 : vector<1x128xf32> to vector<8x128xf32>
    %22 = arith.addf %19, %21 : vector<8x128xf32>
    %cst_14 = arith.constant dense<0xFF800000> : vector<8xf32>
    %23 = vector.multi_reduction <maximumf>, %22, %cst_14 [1] : vector<8x128xf32> to vector<8xf32>
    %24 = vector.shape_cast %23 : vector<8xf32> to vector<8x1xf32>
    %25 = vector.broadcast %24 : vector<8x1xf32> to vector<8x128xf32>
    %26 = arith.subf %22, %25 : vector<8x128xf32>
    %27 = math.exp %26 : vector<8x128xf32>
    %cst_15 = arith.constant dense<0.000000e+00> : vector<8xf32>
    %28 = vector.multi_reduction <add>, %27, %cst_15 [1] : vector<8x128xf32> to vector<8xf32>
    %29 = vector.shape_cast %28 : vector<8xf32> to vector<8x1xf32>
    %30 = vector.broadcast %29 : vector<8x1xf32> to vector<8x128xf32>
    %31 = arith.divf %27, %30 : vector<8x128xf32>
    %c0_16 = arith.constant 0 : index
    %c0_17 = arith.constant 0 : index
    %32 = vector.load %arg3[%c0_16, %c0_17] : memref<8x8xf32, #tpu.memory_space<vmem>>, vector<8x8xf32>
    %cst_18 = arith.constant 9.99999968E-21 : f32
    %33 = vector.broadcast %cst_18 : f32 to vector<8x8xf32>
    %34 = arith.addf %32, %33 : vector<8x8xf32>
    %35 = math.log %34 : vector<8x8xf32>
    %cst_19 = arith.constant 0.000000e+00 : f32
    %36 = vector.broadcast %cst_19 : f32 to vector<8x8xf32>
    %37 = arith.subf %36, %35 : vector<8x8xf32>
    %cst_20 = arith.constant 9.99999968E-21 : f32
    %38 = vector.broadcast %cst_20 : f32 to vector<8x8xf32>
    %39 = arith.addf %37, %38 : vector<8x8xf32>
    %40 = math.log %39 : vector<8x8xf32>
    %cst_21 = arith.constant 0.000000e+00 : f32
    %41 = vector.broadcast %cst_21 : f32 to vector<8x8xf32>
    %42 = arith.subf %41, %40 : vector<8x8xf32>
    %43 = tpu.iota {dimensions = array<i32: 1>} : vector<8x8xi32>
    %c6_i32 = arith.constant 6 : i32
    %44 = vector.broadcast %c6_i32 : i32 to vector<8x8xi32>
    %45 = arith.cmpi slt, %43, %44 : vector<8x8xi32>
    %46 = vector.extract_strided_slice %31 {offsets = [0, 0], sizes = [8, 8], strides = [1, 1]} : vector<8x128xf32> to vector<8x8xf32>
    %47 = arith.addf %46, %42 : vector<8x8xf32>
    %cst_22 = arith.constant -1.000000e+30 : f32
    %48 = vector.broadcast %cst_22 : f32 to vector<8x8xf32>
    %49 = arith.select %45, %47, %48 : vector<8x8xi1>, vector<8x8xf32>
    %cst_23 = arith.constant dense<0xFF800000> : vector<8xf32>
    %50 = vector.multi_reduction <maximumf>, %49, %cst_23 [1] : vector<8x8xf32> to vector<8xf32>
    %51 = vector.shape_cast %50 : vector<8xf32> to vector<8x1xf32>
    %52 = vector.broadcast %51 : vector<8x1xf32> to vector<8x8xf32>
    %53 = arith.cmpf oeq, %49, %52 : vector<8x8xf32>
    %c8_i32 = arith.constant 8 : i32
    %54 = vector.broadcast %c8_i32 : i32 to vector<8x8xi32>
    %55 = arith.select %53, %43, %54 : vector<8x8xi1>, vector<8x8xi32>
    %cst_24 = arith.constant dense<2147483647> : vector<8xi32>
    %56 = vector.multi_reduction <minsi>, %55, %cst_24 [1] : vector<8x8xi32> to vector<8xi32>
    %57 = vector.shape_cast %56 : vector<8xi32> to vector<8x1xi32>
    %58 = tpu.iota {dimensions = array<i32: 1>} : vector<8x128xi32>
    %c64_i32 = arith.constant 64 : i32
    %59 = vector.broadcast %c64_i32 : i32 to vector<8x1xi32>
    %60 = arith.addi %57, %59 : vector<8x1xi32>
    %61 = vector.broadcast %60 : vector<8x1xi32> to vector<8x128xi32>
    %62 = arith.cmpi eq, %58, %61 : vector<8x128xi32>
    %63 = arith.extui %62 : vector<8x128xi1> to vector<8x128xi32>
    %64 = arith.sitofp %63 : vector<8x128xi32> to vector<8x128xf32>
    %65 = arith.addf %15, %64 : vector<8x128xf32>
    %c0_25 = arith.constant 0 : index
    %c0_26 = arith.constant 0 : index
    %66 = vector.load %arg8[%c0_25, %c0_26] : memref<8x128xf32, #tpu.memory_space<vmem>>, vector<8x128xf32>
    tpu.vector_store %arg8[%c0_25, %c0_26], %65 {strides = array<i32>} : memref<8x128xf32, #tpu.memory_space<vmem>>, vector<8x128xf32>,
    return
  }
  func.func @transform_0(%arg0: i32) -> (i32, i32) {
    %c0_i32 = arith.constant 0 : i32
    %c0_i32_0 = arith.constant 0 : i32
    return %arg0, %c0_i32 : i32, i32
  }
  func.func @transform_1(%arg0: i32) -> (i32, i32) {
    %c0_i32 = arith.constant 0 : i32
    %c0_i32_0 = arith.constant 0 : i32
    return %arg0, %c0_i32 : i32, i32
  }
  func.func @transform_2(%arg0: i32) -> (i32, i32) {
    %c0_i32 = arith.constant 0 : i32
    %c0_i32_0 = arith.constant 0 : i32
    return %arg0, %c0_i32 : i32, i32
  }
  func.func @transform_3(%arg0: i32) -> (i32, i32) {
    %c0_i32 = arith.constant 0 : i32
    %c0_i32_0 = arith.constant 0 : i32
    %c0_i32_1 = arith.constant 0 : i32
    return %c0_i32, %c0_i32_0 : i32, i32
  }
  func.func @transform_4(%arg0: i32) -> (i32, i32) {
    %c0_i32 = arith.constant 0 : i32
    %c0_i32_0 = arith.constant 0 : i32
    %c0_i32_1 = arith.constant 0 : i32
    return %c0_i32, %c0_i32_0 : i32, i32
  }
  func.func @transform_5(%arg0: i32) -> (i32, i32) {
    %c0_i32 = arith.constant 0 : i32
    %c0_i32_0 = arith.constant 0 : i32
    %c0_i32_1 = arith.constant 0 : i32
    return %c0_i32, %c0_i32_0 : i32, i32
  }
  func.func @transform_6(%arg0: i32) -> (i32, i32) {
    %c0_i32 = arith.constant 0 : i32
    %c0_i32_0 = arith.constant 0 : i32
    %c0_i32_1 = arith.constant 0 : i32
    return %c0_i32, %c0_i32_0 : i32, i32
  }
  func.func @transform_7(%arg0: i32) -> (i32, i32) {
    %c0_i32 = arith.constant 0 : i32
    %c0_i32_0 = arith.constant 0 : i32
    return %arg0, %c0_i32 : i32, i32
  }
}

</mosaic_0001>

<bundles_post_ra>
// kernel: latent_bert_h.1
= control target key start
LH: loop header
LB: loop body
LE: loop exit
PB: predicated region body
PF: predicated region fallthrough
CT: control target
= control target key end

     0   :  { %vm1040_vm5 = vcmask 64512   ;;  %s1948_s3 = inlined_call_operand.vmem [shape: bf16[768,128], index: 3, kind: input, shape index: {}]   ;;  %s1949_s4 = inlined_call_operand.vmem [shape: f32[1,128], index: 4, kind: input, shape index: {}]   ;;  %s1950_s0 = inlined_call_operand.vmem [shape: f32[8,768], index: 0, kind: input, shape index: {}]   ;;  %s1951_s5 = inlined_call_operand.vmem [shape: bf16[768,128], index: 5, kind: input, shape index: {}]   ;;  %s1952_s1 = inlined_call_operand.vmem [shape: f32[8,768], index: 1, kind: input, shape index: {}]   ;;  %s1953_s6 = inlined_call_operand.vmem [shape: f32[1,128], index: 6, kind: input, shape index: {}]   ;;  %s1954_s2 = inlined_call_operand.vmem [shape: f32[8,8], index: 2, kind: input, shape index: {}]   ;;  %s1955_s7 = inlined_call_operand.vmem [shape: f32[8,128], index: 7, kind: output, shape index: {}]  }
   0x1   :  { %v1463_v0 = vld [vmem:[%s1948_s3 + $0x38] sm:$0xff]  ;;  %v1462_v4 = vld [vmem:[%s1948_s3 + $0x30] sm:$0xff]  ;;  %v1461_v8 = vld [vmem:[%s1948_s3 + $0x28] sm:$0xff] }
   0x2   :  { %v1471_v1 = vld [vmem:[%s1948_s3 + $0x78] sm:$0xff]  ;;  %426 = vmatpush.bf16.msra.mxu0 %v1463_v0  ;;  %v1470_v5 = vld [vmem:[%s1948_s3 + $0x70] sm:$0xff]  ;;  %v1469_v9 = vld [vmem:[%s1948_s3 + $0x68] sm:$0xff] }
   0x3   :  { %v1479_v2 = vld [vmem:[%s1948_s3 + $0xb8] sm:$0xff]  ;;  %439 = vmatpush.bf16.msra.mxu1 %v1471_v1  ;;  %v1478_v6 = vld [vmem:[%s1948_s3 + $0xb0] sm:$0xff]  ;;  %v1477_v10 = vld [vmem:[%s1948_s3 + $0xa8] sm:$0xff] }
   0x4   :  { %v1487_v3 = vld [vmem:[%s1948_s3 + $0xf8] sm:$0xff]  ;;  %452 = vmatpush.bf16.msra.mxu2 %v1479_v2  ;;  %v1486_v7 = vld [vmem:[%s1948_s3 + $0xf0] sm:$0xff]  ;;  %v1485_v11 = vld [vmem:[%s1948_s3 + $0xe8] sm:$0xff] }
   0x5   :  { %465 = vmatpush.bf16.msra.mxu3 %v1487_v3  ;;  %v1460_v12 = vld [vmem:[%s1948_s3 + $0x20] sm:$0xff]  ;;  %v1459_v16 = vld [vmem:[%s1948_s3 + $0x18] sm:$0xff]  ;;  %v1458_v20 = vld [vmem:[%s1948_s3 + $0x10] sm:$0xff] }
   0x6   :  { %427 = vmatpush.bf16.msra.mxu0 %v1462_v4  ;;  %v1468_v13 = vld [vmem:[%s1948_s3 + $0x60] sm:$0xff]  ;;  %v1467_v17 = vld [vmem:[%s1948_s3 + $0x58] sm:$0xff]  ;;  %v1466_v21 = vld [vmem:[%s1948_s3 + $0x50] sm:$0xff] }
   0x7   :  { %440 = vmatpush.bf16.msra.mxu1 %v1470_v5  ;;  %v1476_v14 = vld [vmem:[%s1948_s3 + $0xa0] sm:$0xff]  ;;  %v1475_v18 = vld [vmem:[%s1948_s3 + $0x98] sm:$0xff]  ;;  %v1474_v22 = vld [vmem:[%s1948_s3 + $0x90] sm:$0xff] }
   0x8   :  { %453 = vmatpush.bf16.msra.mxu2 %v1478_v6  ;;  %v1484_v15 = vld [vmem:[%s1948_s3 + $0xe0] sm:$0xff]  ;;  %v1483_v19 = vld [vmem:[%s1948_s3 + $0xd8] sm:$0xff]  ;;  %v1482_v23 = vld [vmem:[%s1948_s3 + $0xd0] sm:$0xff] }
   0x9   :  { %466 = vmatpush.bf16.msra.mxu3 %v1486_v7  ;;  %v1457_v24 = vld [vmem:[%s1948_s3 + $0x8] sm:$0xff]  ;;  %v1456_v28 = vld [vmem:[%s1948_s3] sm:$0xff]  ;;  %v1495_v32 = vld [vmem:[%s1948_s3 + $0x138] sm:$0xff] }
   0xa   :  { %428 = vmatpush.bf16.msra.mxu0 %v1461_v8  ;;  %v1465_v25 = vld [vmem:[%s1948_s3 + $0x48] sm:$0xff]  ;;  %v1464_v29 = vld [vmem:[%s1948_s3 + $0x40] sm:$0xff]  ;;  %v28_v33 = vld [vmem:[%s1950_s0 + $0x10] sm:$0xff] }
   0xb   :  { %441 = vmatpush.bf16.msra.mxu1 %v1469_v9  ;;  %v1473_v26 = vld [vmem:[%s1948_s3 + $0x88] sm:$0xff]  ;;  %v1472_v30 = vld [vmem:[%s1948_s3 + $0x80] sm:$0xff]  ;;  %v1503_v35 = vld [vmem:[%s1948_s3 + $0x178] sm:$0xff]  ;;  %v34_v40 = vpack.c.bf16 %v28_v33, %v28_v33 }
   0xc   :  { %454 = vmatpush.bf16.msra.mxu2 %v1477_v10  ;;  %v1481_v27 = vld [vmem:[%s1948_s3 + $0xc8] sm:$0xff]  ;;  %v1480_v31 = vld [vmem:[%s1948_s3 + $0xc0] sm:$0xff]  ;;  %v29_v36 = vld [vmem:[%s1950_s0 + $0x18] sm:$0xff] }
   0xd   :  { %467 = vmatpush.bf16.msra.mxu3 %v1485_v11  ;;  %v26_v34 = vld [vmem:[%s1950_s0] sm:$0xff]  ;;  %v27_v37 = vld [vmem:[%s1950_s0 + $0x8] sm:$0xff]  ;;  %v1511_v38 = vld [vmem:[%s1951_s5 + $0x38] sm:$0xff]  ;;  %v35_v42 = vpack.c.bf16 %v29_v36, %v29_v36 }
   0xe   :  { %429 = vmatpush.bf16.msra.mxu0 %v1460_v12  ;;  %v1519_v39 = vld [vmem:[%s1951_s5 + $0x78] sm:$0xff]  ;;  %v32_v41 = vpack.c.bf16 %v26_v34, %v26_v34  ;;  %v33_v43 = vpack.c.bf16 %v27_v37, %v27_v37  ;;  %v1494_v44 = vld [vmem:[%s1948_s3 + $0x130] sm:$0xff]  ;;  %v1493_v48 = vld [vmem:[%s1948_s3 + $0x128] sm:$0xff] }
   0xf   :  { %442 = vmatpush.bf16.msra.mxu1 %v1468_v13  ;;  %v1502_v45 = vld [vmem:[%s1948_s3 + $0x170] sm:$0xff]  ;;  %v1501_v49 = vld [vmem:[%s1948_s3 + $0x168] sm:$0xff]  ;;  %v1492_v52 = vld [vmem:[%s1948_s3 + $0x120] sm:$0xff] }
  0x10   :  { %455 = vmatpush.bf16.msra.mxu2 %v1476_v14  ;;  %v1510_v46 = vld [vmem:[%s1951_s5 + $0x30] sm:$0xff]  ;;  %v1509_v50 = vld [vmem:[%s1951_s5 + $0x28] sm:$0xff]  ;;  %v1500_v53 = vld [vmem:[%s1948_s3 + $0x160] sm:$0xff] }
  0x11   :  { %468 = vmatpush.bf16.msra.mxu3 %v1484_v15  ;;  %v1518_v47 = vld [vmem:[%s1951_s5 + $0x70] sm:$0xff]  ;;  %v1517_v51 = vld [vmem:[%s1951_s5 + $0x68] sm:$0xff]  ;;  %v1508_v54 = vld [vmem:[%s1951_s5 + $0x20] sm:$0xff] }
  0x12   :  { %430 = vmatpush.bf16.msra.mxu0 %v1459_v16  ;;  %v1516_v55 = vld [vmem:[%s1951_s5 + $0x60] sm:$0xff]  ;;  %v1491_v56 = vld [vmem:[%s1948_s3 + $0x118] sm:$0xff]  ;;  %v1490_v60 = vld [vmem:[%s1948_s3 + $0x110] sm:$0xff] }
  0x13   :  { %443 = vmatpush.bf16.msra.mxu1 %v1467_v17  ;;  %v1499_v57 = vld [vmem:[%s1948_s3 + $0x158] sm:$0xff]  ;;  %v1498_v61 = vld [vmem:[%s1948_s3 + $0x150] sm:$0xff]  ;;  %v1489_v0 = vld [vmem:[%s1948_s3 + $0x108] sm:$0xff] }
  0x14   :  { %456 = vmatpush.bf16.msra.mxu2 %v1475_v18  ;;  %v1507_v58 = vld [vmem:[%s1951_s5 + $0x18] sm:$0xff]  ;;  %v1506_v62 = vld [vmem:[%s1951_s5 + $0x10] sm:$0xff]  ;;  %v1497_v1 = vld [vmem:[%s1948_s3 + $0x148] sm:$0xff] }
  0x15   :  { %469 = vmatpush.bf16.msra.mxu3 %v1483_v19  ;;  %v1515_v59 = vld [vmem:[%s1951_s5 + $0x58] sm:$0xff]  ;;  %v1514_v63 = vld [vmem:[%s1951_s5 + $0x50] sm:$0xff]  ;;  %v1505_v2 = vld [vmem:[%s1951_s5 + $0x8] sm:$0xff] }
  0x16   :  { %431 = vmatpush.bf16.msra.mxu0 %v1458_v20  ;;  %v1513_v3 = vld [vmem:[%s1951_s5 + $0x48] sm:$0xff]  ;;  %v1488_v4 = vld [vmem:[%s1948_s3 + $0x100] sm:$0xff]  ;;  %v1527_v8 = vld [vmem:[%s1951_s5 + $0xb8] sm:$0xff] }
  0x17   :  { %444 = vmatpush.bf16.msra.mxu1 %v1466_v21  ;;  %v1496_v5 = vld [vmem:[%s1948_s3 + $0x140] sm:$0xff]  ;;  %v1535_v11 = vld [vmem:[%s1951_s5 + $0xf8] sm:$0xff]  ;;  %v527_v12 = vld [vmem:[%s1952_s1 + $0x8] sm:$0xff] }
  0x18   :  { %457 = vmatpush.bf16.msra.mxu2 %v1474_v22  ;;  %v1504_v6 = vld [vmem:[%s1951_s5] sm:$0xff]  ;;  %v31_v13 = vld [vmem:[%s1950_s0 + $0x28] sm:$0xff]  ;;  %v1543_v14 = vld [vmem:[%s1951_s5 + $0x138] sm:$0xff]  ;;  %v533_v18 = vpack.c.bf16 %v527_v12, %v527_v12 }
  0x19   :  { %470 = vmatpush.bf16.msra.mxu3 %v1482_v23  ;;  %v1512_v7 = vld [vmem:[%s1951_s5 + $0x40] sm:$0xff]  ;;  %v1551_v15 = vld [vmem:[%s1951_s5 + $0x178] sm:$0xff]  ;;  %v37_v19 = vpack.c.bf16 %v31_v13, %v31_v13  ;;  %v1526_v20 = vld [vmem:[%s1951_s5 + $0xb0] sm:$0xff] }
  0x1a   :  { %432 = vmatpush.bf16.msra.mxu0 %v1457_v24  ;;  %v526_v9 = vld [vmem:[%s1952_s1] sm:$0xff]  ;;  %v1534_v21 = vld [vmem:[%s1951_s5 + $0xf0] sm:$0xff]  ;;  %v1525_v24 = vld [vmem:[%s1951_s5 + $0xa8] sm:$0xff] }
  0x1b   :  { %445 = vmatpush.bf16.msra.mxu1 %v1465_v25  ;;  %v30_v10 = vld [vmem:[%s1950_s0 + $0x20] sm:$0xff]  ;;  %v532_v16 = vpack.c.bf16 %v526_v9, %v526_v9  ;;  %v1542_v22 = vld [vmem:[%s1951_s5 + $0x130] sm:$0xff]  ;;  %v1533_v25 = vld [vmem:[%s1951_s5 + $0xe8] sm:$0xff] }
  0x1c   :  { %458 = vmatpush.bf16.msra.mxu2 %v1473_v26  ;;  %v36_v17 = vpack.c.bf16 %v30_v10, %v30_v10  ;;  %v1550_v23 = vld [vmem:[%s1951_s5 + $0x170] sm:$0xff]  ;;  %v1541_v26 = vld [vmem:[%s1951_s5 + $0x128] sm:$0xff]  ;;  %v1531_v33 = vld [vmem:[%s1951_s5 + $0xd8] sm:$0xff] }
  0x1d   :  { %471 = vmatpush.bf16.msra.mxu3 %v1481_v27  ;;  %v1549_v27 = vld [vmem:[%s1951_s5 + $0x168] sm:$0xff]  ;;  %v1539_v34 = vld [vmem:[%s1951_s5 + $0x118] sm:$0xff]  ;;  %v1522_v36 = vld [vmem:[%s1951_s5 + $0x90] sm:$0xff] }
  0x1e   :  { %433 = vmatpush.bf16.msra.mxu0 %v1456_v28  ;;  %v1524_v28 = vld [vmem:[%s1951_s5 + $0xa0] sm:$0xff]  ;;  %v1530_v37 = vld [vmem:[%s1951_s5 + $0xd0] sm:$0xff] }
  0x1f   :  { %446 = vmatpush.bf16.msra.mxu1 %v1464_v29  ;;  %v1532_v29 = vld [vmem:[%s1951_s5 + $0xe0] sm:$0xff] }
  0x20   :  { %459 = vmatpush.bf16.msra.mxu2 %v1472_v30  ;;  %v1540_v30 = vld [vmem:[%s1951_s5 + $0x120] sm:$0xff] }
  0x21   :  { %472 = vmatpush.bf16.msra.mxu3 %v1480_v31  ;;  %434 = vmatmul.bf16.vlgmr.msra.gmra.mxu0 %v32_v41  ;;  %v1548_v31 = vld [vmem:[%s1951_s5 + $0x160] sm:$0xff]  ;;  %v1529_v41 = vld [vmem:[%s1951_s5 + $0xc8] sm:$0xff] }
  0x22   :  { %478 = vmatpush.bf16.msrb.mxu0 %v1495_v32  ;;  %447 = vmatmul.bf16.vlgmr.msra.gmra.mxu1 %v33_v43  ;;  %v1523_v32 = vld [vmem:[%s1951_s5 + $0x98] sm:$0xff]  ;;  %v1545_v43 = vld [vmem:[%s1951_s5 + $0x148] sm:$0xff] }
  0x23   :  { %491 = vmatpush.bf16.msrb.mxu1 %v1503_v35  ;;  %460 = vmatmul.bf16.vlgmr.msra.gmra.mxu2 %v34_v40  ;;  %v1547_v35 = vld [vmem:[%s1951_s5 + $0x158] sm:$0xff]  ;;  %v1521_v40 = vld [vmem:[%s1951_s5 + $0x88] sm:$0xff] }
  0x24   :  { %926 = vmatpush.bf16.msrb.mxu2 %v1511_v38  ;;  %473 = vmatmul.bf16.vlgmr.msra.gmra.mxu3 %v35_v42  ;;  %v1538_v38 = vld [vmem:[%s1951_s5 + $0x110] sm:$0xff]  ;;  %v1537_v42 = vld [vmem:[%s1951_s5 + $0x108] sm:$0xff] }
  0x25   :  { %939 = vmatpush.bf16.msrb.mxu3 %v1519_v39  ;;  %v1546_v39 = vld [vmem:[%s1951_s5 + $0x150] sm:$0xff] }
  0x26   :  { %479 = vmatpush.bf16.msrb.mxu0 %v1494_v44  ;;  %v1520_v44 = vld [vmem:[%s1951_s5 + $0x80] sm:$0xff] }
  0x27   :  { %492 = vmatpush.bf16.msrb.mxu1 %v1502_v45  ;;  %v1528_v45 = vld [vmem:[%s1951_s5 + $0xc0] sm:$0xff] }
  0x28   :  { %927 = vmatpush.bf16.msrb.mxu2 %v1510_v46  ;;  %v1536_v46 = vld [vmem:[%s1951_s5 + $0x100] sm:$0xff] }
  0x29   :  { %940 = vmatpush.bf16.msrb.mxu3 %v1518_v47  ;;  %v528_v47 = vld [vmem:[%s1952_s1 + $0x10] sm:$0xff] }
  0x2a   :  { %480 = vmatpush.bf16.msrb.mxu0 %v1493_v48  ;;  %v529_v48 = vld [vmem:[%s1952_s1 + $0x18] sm:$0xff] }
  0x2b   :  { %493 = vmatpush.bf16.msrb.mxu1 %v1501_v49  ;;  %v1544_v49 = vld [vmem:[%s1951_s5 + $0x140] sm:$0xff] }
  0x2c   :  { %928 = vmatpush.bf16.msrb.mxu2 %v1509_v50  ;;  %v530_v50 = vld [vmem:[%s1952_s1 + $0x20] sm:$0xff] }
  0x2d   :  { %941 = vmatpush.bf16.msrb.mxu3 %v1517_v51  ;;  %v531_v51 = vld [vmem:[%s1952_s1 + $0x28] sm:$0xff] }
  0x2e   :  { %481 = vmatpush.bf16.msrb.mxu0 %v1492_v52  ;;  %v534_v52 = vpack.c.bf16 %v528_v47, %v528_v47 }
  0x2f   :  { %494 = vmatpush.bf16.msrb.mxu1 %v1500_v53  ;;  %v535_v53 = vpack.c.bf16 %v529_v48, %v529_v48 }
  0x30   :  { %929 = vmatpush.bf16.msrb.mxu2 %v1508_v54  ;;  %v536_v54 = vpack.c.bf16 %v530_v50, %v530_v50 }
  0x31   :  { %942 = vmatpush.bf16.msrb.mxu3 %v1516_v55  ;;  %v537_v55 = vpack.c.bf16 %v531_v51, %v531_v51 }
  0x32   :  { %482 = vmatpush.bf16.msrb.mxu0 %v1491_v56  ;;  %v1553_v56 = vld [vmem:[%s1949_s4] ss:$0 sm:$0xff] }
  0x33   :  { %495 = vmatpush.bf16.msrb.mxu1 %v1499_v57 }
  0x34   :  { %930 = vmatpush.bf16.msrb.mxu2 %v1507_v58 }
  0x35   :  { %943 = vmatpush.bf16.msrb.mxu3 %v1515_v59 }
  0x36   :  { %483 = vmatpush.bf16.msrb.mxu0 %v1490_v60 }
  0x37   :  { %496 = vmatpush.bf16.msrb.mxu1 %v1498_v61 }
  0x38   :  { %931 = vmatpush.bf16.msrb.mxu2 %v1506_v62 }
  0x39   :  { %944 = vmatpush.bf16.msrb.mxu3 %v1514_v63 }
  0x3a   :  { %484 = vmatpush.bf16.msrb.mxu0 %v1489_v0 }
  0x3b   :  { %497 = vmatpush.bf16.msrb.mxu1 %v1497_v1 }
  0x3c   :  { %932 = vmatpush.bf16.msrb.mxu2 %v1505_v2 }
  0x3d   :  { %945 = vmatpush.bf16.msrb.mxu3 %v1513_v3 }
  0x3e   :  { %485 = vmatpush.bf16.msrb.mxu0 %v1488_v4 }
  0x3f   :  { %498 = vmatpush.bf16.msrb.mxu1 %v1496_v5 }
  0x40   :  { %933 = vmatpush.bf16.msrb.mxu2 %v1504_v6 }
  0x41   :  { %946 = vmatpush.bf16.msrb.mxu3 %v1512_v7  ;;  %486 = vmatmul.bf16.vlgmr.msrb.gmra.mxu0 %v36_v17 }
  0x42   :  { %952 = vmatpush.bf16.msra.mxu0 %v1527_v8  ;;  %499 = vmatmul.bf16.vlgmr.msrb.gmra.mxu1 %v37_v19 }
  0x43   :  { %965 = vmatpush.bf16.msra.mxu1 %v1535_v11  ;;  %934 = vmatmul.bf16.vlgmr.msrb.gmra.mxu2 %v532_v16 }
  0x44   :  { %978 = vmatpush.bf16.msra.mxu2 %v1543_v14  ;;  %947 = vmatmul.bf16.vlgmr.msrb.gmra.mxu3 %v533_v18 }
  0x45   :  { %991 = vmatpush.bf16.msra.mxu3 %v1551_v15  ;;  %v1554_v15 = vld [vmem:[%s1953_s6] ss:$0 sm:$0xff] }
  0x46   :  { %953 = vmatpush.bf16.msra.mxu0 %v1526_v20 }
  0x47   :  { %966 = vmatpush.bf16.msra.mxu1 %v1534_v21 }
  0x48   :  { %979 = vmatpush.bf16.msra.mxu2 %v1542_v22 }
  0x49   :  { %992 = vmatpush.bf16.msra.mxu3 %v1550_v23 }
  0x4a   :  { %954 = vmatpush.bf16.msra.mxu0 %v1525_v24 }
  0x4b   :  { %967 = vmatpush.bf16.msra.mxu1 %v1533_v25 }
  0x4c   :  { %980 = vmatpush.bf16.msra.mxu2 %v1541_v26 }
  0x4d   :  { %993 = vmatpush.bf16.msra.mxu3 %v1549_v27 }
  0x4e   :  { %955 = vmatpush.bf16.msra.mxu0 %v1524_v28 }
  0x4f   :  { %968 = vmatpush.bf16.msra.mxu1 %v1532_v29 }
  0x50   :  { %981 = vmatpush.bf16.msra.mxu2 %v1540_v30 }
  0x51   :  { %994 = vmatpush.bf16.msra.mxu3 %v1548_v31 }
  0x52   :  { %956 = vmatpush.bf16.msra.mxu0 %v1523_v32 }
  0x53   :  { %969 = vmatpush.bf16.msra.mxu1 %v1531_v33 }
  0x54   :  { %982 = vmatpush.bf16.msra.mxu2 %v1539_v34  ;;  %v1026_v34 = vld [vmem:[%s1954_s2] sm:$0xff] }
  0x55   :  { %995 = vmatpush.bf16.msra.mxu3 %v1547_v35  ;;  %v1027_v35 = vadd.f32 1e-20, %v1026_v34 }
  0x56   :  { %957 = vmatpush.bf16.msra.mxu0 %v1522_v36 }
  0x57   :  { %970 = vmatpush.bf16.msra.mxu1 %v1530_v37 }
  0x58   :  { %983 = vmatpush.bf16.msra.mxu2 %v1538_v38 }
  0x59   :  { %996 = vmatpush.bf16.msra.mxu3 %v1546_v39 }
  0x5a   :  { %958 = vmatpush.bf16.msra.mxu0 %v1521_v40 }
  0x5b   :  { %971 = vmatpush.bf16.msra.mxu1 %v1529_v41 }
  0x5c   :  { %984 = vmatpush.bf16.msra.mxu2 %v1537_v42 }
  0x5d   :  { %997 = vmatpush.bf16.msra.mxu3 %v1545_v43 }
  0x5e   :  { %959 = vmatpush.bf16.msra.mxu0 %v1520_v44 }
  0x5f   :  { %972 = vmatpush.bf16.msra.mxu1 %v1528_v45 }
  0x60   :  { %985 = vmatpush.bf16.msra.mxu2 %v1536_v46  ;;  %v1035_v46 = vlaneseq }
  0x61   :  { %998 = vmatpush.bf16.msra.mxu3 %v1544_v49  ;;  %960 = vmatmul.bf16.vlgmr.msra.gmra.mxu0 %v534_v52 }
  0x62   :  { %973 = vmatmul.bf16.vlgmr.msra.gmra.mxu1 %v535_v53  ;;  %v1036_v52 = vand.u32 127, %v1035_v46 }
  0x63   :  { %986 = vmatmul.bf16.vlgmr.msra.gmra.mxu2 %v536_v54 }
  0x64   :  { %999 = vmatmul.bf16.vlgmr.msra.gmra.mxu3 %v537_v55  ;;  %vm1037_vm4 = vcmp.lt.s32.totalorder %v1036_v52, 6 }
  0x9e   :  { %v435_v57 = vpop.f32.mrf.mxu0 }
  0x9f   :  { %v436_v58 = vadd.f32 %v1553_v56, %v435_v57  ;;  %v448_v59 = vpop.f32.mrf.mxu1 }
  0xa1   :  { %v449_v60 = vadd.f32 %v448_v59, %v436_v58 }
  0xa6   :  { %v461_v61 = vpop.f32.mrf.mxu2  ;;  %v437_v0 = vpop.f32.mrf.mxu0 }
  0xa7   :  { %v462_v62 = vadd.f32 %v461_v61, %v449_v60  ;;  %v474_v63 = vpop.f32.mrf.mxu3  ;;  %v450_v2 = vpop.f32.mrf.mxu1 }
  0xa9   :  { %v475_v1 = vadd.f32 %v474_v63, %v462_v62 }
  0xae   :  { %v463_v3 = vpop.f32.mrf.mxu2 }
  0xaf   :  { %v476_v4 = vpop.f32.mrf.mxu3 }
  0xbe   :  { %v487_v5 = vpop.f32.mrf.mxu0 }
  0xbf   :  { %v488_v6 = vadd.f32 %v487_v5, %v475_v1  ;;  %v500_v7 = vpop.f32.mrf.mxu1 }
  0xc1   :  { %v1935_v8 = vadd.f32 %v500_v7, %v488_v6 }
  0xc6   :  { %v935_v9 = vpop.f32.mrf.mxu2  ;;  %v489_v11 = vpop.f32.mrf.mxu0 }
  0xc7   :  { %v948_v10 = vpop.f32.mrf.mxu3  ;;  %v502_v12 = vpop.f32.mrf.mxu1  ;;  %v936_v16 = vadd.f32 %v1554_v15, %v935_v9 }
  0xc9   :  { %v949_v17 = vadd.f32 %v948_v10, %v936_v16 }
  0xce   :  { %v937_v13 = vpop.f32.mrf.mxu2 }
  0xcf   :  { %v950_v14 = vpop.f32.mrf.mxu3 }
  0xde   :  { %v961_v18 = vpop.f32.mrf.mxu0 }
  0xdf   :  { %v974_v19 = vpop.f32.mrf.mxu1  ;;  %v962_v20 = vadd.f32 %v961_v18, %v949_v17 }
  0xe1   :  { %v975_v21 = vadd.f32 %v974_v19, %v962_v20 }
  0xe6   :  { %v987_v22 = vpop.f32.mrf.mxu2  ;;  %v963_v25 = vpop.f32.mrf.mxu0 }
  0xe7   :  { %v1000_v23 = vpop.f32.mrf.mxu3  ;;  %v988_v24 = vadd.f32 %v987_v22, %v975_v21  ;;  %v976_v26 = vpop.f32.mrf.mxu1 }
  0xe9   :  { %v1001_v27 = vadd.f32 %v1000_v23, %v988_v24 }
  0xeb   :  { %1004 = vmax.xlane.f32.xlu0 %v1001_v27 }
  0xee   :  { %v989_v28 = vpop.f32.mrf.mxu2 }
  0xef   :  { %v1002_v29 = vpop.f32.mrf.mxu3 }
 0x15e   :  { %v1005_v30 = vpop.xlane.xlu0 %1004 }
 0x15f   :  { %v1006_v31 = vsub.f32 %v1001_v27, %v1005_v30  ;;  %v1567_v27 = vmov 0.0  }
 0x161   :  { %v1007_v32 = vmul.f32 1.442695, %v1006_v31 }
 0x163   :  { %1555 = vpow2.f32 %v1007_v32 }
 0x164   :  { %1557 = vlog2.f32 %v1027_v35 }
 0x169   :  { %v1556_v33 = vpop.eup %1555 }
 0x16a   :  { %1009 = vadd.xlane.f32.xlu0 %v1556_v33  ;;  %v1558_v36 = vpop.eup %1557 }
 0x16b   :  { %v1029_v37 = vmul.f32 0.6931472, %v1558_v36 }
 0x16d   :  { %v1030_v38 = vsub.f32 0.0, %v1029_v37 }
 0x16f   :  { %v1031_v39 = vadd.f32 1e-20, %v1030_v38 }
 0x1dd   :  { %v1010_v40 = vpop.xlane.xlu0 %1009 }
 0x1de   :  { %1559 = vrcp.f32 %v1010_v40  ;;  %v1022_v45 = vand.u32 2147483648, %v1010_v40  ;;  %v1020_v48 = vand.u32 2147483647, %v1010_v40  ;;  %vm1016_vm1 = vweird.f32 %v1010_v40 }
 0x1df   :  { %1561 = vlog2.f32 %v1031_v39 }
 0x1e0   :  { %v1023_v51 = vor.u32 1.1754944e-38, %v1022_v45  ;;  %vm1021_vm3 = vcmp.eq.f32.partialorder %v1020_v48, 8.507059e+37 }
 0x1e4   :  { %v1560_v41 = vpop.eup %1559 }
 0x1e5   :  { %v1012_v42 = vmul.f32 %v1560_v41, %v1010_v40  ;;  %v1562_v43 = vpop.eup %1561  ;;  %vm1017_vm0 = vweird.f32 %v1560_v41 }
 0x1e6   :  { %v1033_v49 = vmul.f32 0.6931472, %v1562_v43  ;;  %vm1018_vm2 = vmor %vm1016_vm1, %vm1017_vm0 }
 0x1e7   :  { %v1013_v44 = vsub.f32 1.0, %v1012_v42 }
 0x1e8   :  { %v1034_v54 = vsub.f32 0.0, %v1033_v49 }
 0x1e9   :  { %v1014_v47 = vmul.f32 %v1560_v41, %v1013_v44 }
 0x1eb   :  { %v1015_v50 = vadd.f32 %v1560_v41, %v1014_v47 }
 0x1ed   :  { %v1019_v53 = vsel %vm1018_vm2, %v1560_v41, %v1015_v50 }
 0x1ee   :  { %v1024_v55 = vsel %vm1021_vm3, %v1023_v51, %v1019_v53 }
 0x1ef   :  { %v1025_v56 = vmul.f32 %v1556_v33, %v1024_v55 }
 0x1f1   :  { %v1038_v57 = vadd.f32 %v1034_v54, %v1025_v56 }
 0x1f3   :  { %v1039_v58 = vsel %vm1037_vm4, %v1038_v57, -1e+30 }
 0x1f4   :  { %v1041_v59 = vsel %vm1040_vm5, %v1039_v58, -inf }
 0x1f5   :  { %1042 = vmax.xlane.f32.xlu1 %v1041_v59 }
 0x1fd   :  { %504 = vmax.xlane.f32.xlu1 %v1935_v8 }
 0x268   :  { %v1043_v60 = vpop.xlane.xlu1 %1042 }
 0x269   :  { %vm1044_vm6 = vcmp.eq.f32.partialorder %v1039_v58, %v1043_v60 }
 0x26a   :  { %v1045_v61 = vsel %vm1044_vm6, %v1036_v52, 8 }
 0x26b   :  { %v1046_v62 = vsel %vm1040_vm5, %v1045_v61, 2147483647 }
 0x26c   :  { %v1048_v63 = vshra.s32 %v1046_v62, 16  ;;  %v1047_v5 = vand.u32 65535, %v1046_v62 }
 0x26e   :  { %v1050_v0 = vcvt.s32.f32 %v1048_v63  ;;  %v1049_v7 = vcvt.s32.f32 %v1047_v5 }
 0x270   :  { %1051 = vmin.xlane.f32.xlu2 %v1050_v0  ;;  %v505_v1 = vpop.xlane.xlu1 %504 }
 0x271   :  { %v506_v2 = vsub.f32 %v1935_v8, %v505_v1 }
 0x273   :  { %v507_v3 = vmul.f32 1.442695, %v506_v2 }
 0x275   :  { %1563 = vpow2.f32 %v507_v3 }
 0x27b   :  { %v1564_v4 = vpop.eup %1563 }
 0x27c   :  { %509 = vadd.xlane.f32.xlu2 %v1564_v4 }
 0x2e3   :  { %v1052_v6 = vpop.xlane.xlu2 %1051 }
 0x2e4   :  { %vm1053_vm7 = vcmp.eq.f32.partialorder %v1050_v0, %v1052_v6  ;;  %v1058_v15 = vcvt.f32.s32 %v1052_v6 }
 0x2e5   :  { %v1054_v9 = vsel %vm1053_vm7, %v1049_v7, inf }
 0x2e6   :  { %1055 = vmin.xlane.f32.xlu0 %v1054_v9  ;;  %v1059_v19 = vshll.u32 %v1058_v15, 16 }
 0x2ef   :  { %v510_v10 = vpop.xlane.xlu2 %509 }
 0x2f0   :  { %1565 = vrcp.f32 %v510_v10  ;;  %v522_v8 = vand.u32 2147483648, %v510_v10  ;;  %vm516_vm9 = vweird.f32 %v510_v10  ;;  %v520_v17 = vand.u32 2147483647, %v510_v10 }
 0x2f2   :  { %v523_v22 = vor.u32 1.1754944e-38, %v522_v8  ;;  %vm521_vm11 = vcmp.eq.f32.partialorder %v520_v17, 8.507059e+37 }
 0x2f6   :  { %v1566_v11 = vpop.eup %1565 }
 0x2f7   :  { %v512_v12 = vmul.f32 %v1566_v11, %v510_v10  ;;  %vm517_vm8 = vweird.f32 %v1566_v11 }
 0x2f8   :  { %vm518_vm10 = vmor %vm516_vm9, %vm517_vm8 }
 0x2f9   :  { %v513_v13 = vsub.f32 1.0, %v512_v12 }
 0x2fb   :  { %v514_v14 = vmul.f32 %v1566_v11, %v513_v13 }
 0x2fd   :  { %v515_v16 = vadd.f32 %v1566_v11, %v514_v14 }
 0x2ff   :  { %v519_v20 = vsel %vm518_vm10, %v1566_v11, %v515_v16 }
 0x300   :  { %v524_v24 = vsel %vm521_vm11, %v523_v22, %v519_v20 }
 0x301   :  { %v525_v26 = vmul.f32 %v1564_v4, %v524_v24 }
 0x359   :  { %v1056_v18 = vpop.xlane.xlu0 %1055 }
 0x35a   :  { %v1057_v21 = vcvt.f32.s32 %v1056_v18 }
 0x35c   :  { %v1060_v23 = vadd.s32 %v1059_v19, %v1057_v21 }
 0x35e   :  { %v1061_v25 = vadd.s32 64, %v1060_v23 }
 0x360   :  { %vm1062_vm12 = vcmp.eq.s32.totalorder %v1036_v52, %v1061_v25 }
 0x361   :  { %v1455_v28 = vsel %vm1062_vm12, 1.0, %v1567_v27 }
 0x362   :  { %v1065_v29 = vadd.f32 %v1455_v28, %v525_v26 }
 0x364   :  { %1066 = vst [vmem:[%s1955_s7] sm:$0xff] %v1065_v29 }

</bundles_post_ra>
